<compile_context>
chip_gen: v7x
topology: tpu7x:2x2x1
jax: 0.10.0
libtpu: 0.0.40
codegen_flags: <defaults>
</compile_context>

<pallas_src>
import math
from functools import partial

import jax
import jax.numpy as jnp
from jax import lax
from jax.experimental import pallas as pl
from jax.experimental.pallas import tpu as pltpu  # noqa: F401  (TPU backend)

CONFIG = dict(
    transformer_dim=32,
    transformer_hidden_dim=64,
    num_head=2,
    head_dim=16,
    dropout_prob=0.1,  # inference mode -> dropout is identity
)
LN_EPS = 1e-5  # torch.nn.LayerNorm default eps


def _layer_norm(x, gamma, beta):
    # PyTorch LayerNorm: biased variance over the last dim.
    mean = jnp.mean(x, axis=-1, keepdims=True)
    var = jnp.mean(jnp.square(x - mean), axis=-1, keepdims=True)
    return (x - mean) * jax.lax.rsqrt(var + LN_EPS) * gamma + beta


def _gelu_exact(x):
    # nn.GELU() default is the exact (erf) formulation.
    return 0.5 * x * (1.0 + jax.lax.erf(x * (1.0 / math.sqrt(2.0))))


def transformer_layer_kernel(
    x_ref, mask_ref,
    ln1_g_ref, ln1_b_ref,
    wqkv_ref, bqkv_ref, wo_ref, bo_ref,
    ln2_g_ref, ln2_b_ref,
    w1_ref, b1_ref, w2_ref, b2_ref,
    out_ref,
    *, batch, seq_len, num_head, head_dim, mxu_dtype,
):
    def cast(a):
        return a if mxu_dtype is None else a.astype(mxu_dtype)

    def mm(a, b):                     # a @ b, fp32 accumulate on the MXU
        return jnp.dot(cast(a), cast(b), preferred_element_type=jnp.float32)

    def mm_nt(a, b):                  # a @ b.T without materializing the transpose
        return lax.dot_general(cast(a), cast(b), (((1,), (1,)), ((), ())),
                               preferred_element_type=jnp.float32)

    x = x_ref[...]                    # (B*S, D)  -- all rows in one block
    mask = mask_ref[...]              # (B, S)

    # ---------- sub-layer 1: X = dropout(MHA(norm1(X), mask)) + X ----------
    xn = _layer_norm(x, ln1_g_ref[...], ln1_b_ref[...])

    # Fused QKV projection: one (B*S, D) x (D, 3*nh*hd) matmul.
    qkv = mm(xn, wqkv_ref[...]) + bqkv_ref[...]       # (B*S, 3*nh*hd)

    wo = wo_ref[...]                                   # (nh*hd, D)
    dqkv = num_head * head_dim
    d_model = wo.shape[1]
    scale = 1.0 / math.sqrt(head_dim)

    # Hoisted: mask penalty computed once for all batches / heads.
    neg = 1e6 * (1.0 - mask)                           # (B, S)

    attn_rows = []
    for b in range(batch):            # static unroll over (tiny) batch
        rows = slice(b * seq_len, (b + 1) * seq_len)
        qkv_b = qkv[rows, :]                           # (S, 3*nh*hd)
        # Hoisted out of the head loop: broadcast the penalty to score shape once.
        neg_b = jnp.broadcast_to(neg[b:b + 1, :], (seq_len, seq_len))

        attn_b = jnp.zeros((seq_len, d_model), jnp.float32)
        for h in range(num_head):     # static unroll over heads
            qh = qkv_b[:, h * head_dim:(h + 1) * head_dim]
            kh = qkv_b[:, dqkv + h * head_dim:dqkv + (h + 1) * head_dim]
            vh = qkv_b[:, 2 * dqkv + h * head_dim:2 * dqkv + (h + 1) * head_dim]

            scores = mm_nt(qh, kh) * scale             # (S, S), no explicit kh.T
            scores = scores - neg_b
            scores = scores - jnp.max(scores, axis=-1, keepdims=True)  # stable softmax
            p = jnp.exp(scores)
            p = p * pl.reciprocal(jnp.sum(p, axis=-1, keepdims=True), approx=True)
            # TODO(synk): attention-dropout (drop_attn) omitted -- identity at inference.

            ctx_h = mm(p, vh)                          # (S, hd)
            # Accumulate through the output projection (no head concatenation).
            attn_b = attn_b + mm(ctx_h, wo[h * head_dim:(h + 1) * head_dim, :])
        attn_rows.append(attn_b)

    attn_out = attn_rows[0] if batch == 1 else jnp.concatenate(attn_rows, axis=0)
    attn_out = attn_out + bo_ref[...]                  # output-proj bias, added once
    x1 = x + attn_out                                  # dropout1 == identity

    # ---------- sub-layer 2: X = mlpblock(norm2(X)) + X ----------
    xn2 = _layer_norm(x1, ln2_g_ref[...], ln2_b_ref[...])
    hid = mm(xn2, w1_ref[...]) + b1_ref[...]
    hid = _gelu_exact(hid)
    y = mm(hid, w2_ref[...]) + b2_ref[...]
    out_ref[...] = (x1 + y).astype(out_ref.dtype)      # mlp dropouts == identity


def transformer_layer(x, mask, params, *, num_head, head_dim, mxu_dtype=None):
    """x: (B, S, D); mask: (B, S) float with 1 = keep, 0 = pad."""
    B, S, D = x.shape
    x2d = x.reshape(B * S, D)                          # free reshape outside the kernel
    mask2d = mask.reshape(B, S).astype(jnp.float32)

    # Fuse the three QKV projections into one wide matmul operand.
    wqkv = jnp.concatenate([params["wq"], params["wk"], params["wv"]], axis=1)
    bqkv = jnp.concatenate([params["bq"], params["bk"], params["bv"]], axis=1)

    args = [
        x2d, mask2d,
        params["ln1_g"], params["ln1_b"],
        wqkv, bqkv, params["wo"], params["bo"],
        params["ln2_g"], params["ln2_b"],
        params["w1"], params["b1"], params["w2"], params["b2"],
    ]

    kernel = partial(
        transformer_layer_kernel,
        batch=B, seq_len=S, num_head=num_head, head_dim=head_dim,
        mxu_dtype=mxu_dtype,
    )

    # No grid: the whole problem fits in VMEM (<< 1 MiB), so one invocation
    # avoids all per-grid-step overhead and does a single output store.
    out2d = pl.pallas_call(
        kernel,
        out_shape=jax.ShapeDtypeStruct((B * S, D), x.dtype),
    )(*args)
    return out2d.reshape(B, S, D)


def _reference(x, mask, params, *, num_head, head_dim):
    """Pure-JAX reference matching the PyTorch module (inference)."""
    B, S, D = x.shape
    xn = _layer_norm(x, params["ln1_g"], params["ln1_b"])
    q = xn @ params["wq"] + params["bq"]
    k = xn @ params["wk"] + params["bk"]
    v = xn @ params["wv"] + params["bv"]

    def split(t):
        return t.reshape(B, S, num_head, head_dim).transpose(0, 2, 1, 3)

    qh, kh, vh = split(q), split(k), split(v)
    scores = jnp.einsum("bhqd,bhkd->bhqk", qh, kh) / math.sqrt(head_dim)
    scores = scores - 1e6 * (1.0 - mask[:, None, None, :])
    p = jax.nn.softmax(scores, axis=-1)
    ctx = jnp.einsum("bhqk,bhkd->bhqd", p, vh)
    ctx = ctx.transpose(0, 2, 1, 3).reshape(B, S, num_head * head_dim)
    attn = ctx @ params["wo"] + params["bo"]
    x1 = x + attn
    xn2 = _layer_norm(x1, params["ln2_g"], params["ln2_b"])
    hid = _gelu_exact(xn2 @ params["w1"] + params["b1"])
    return x1 + hid @ params["w2"] + params["b2"]


if __name__ == "__main__":
    B, S = 2, 8
    D = CONFIG["transformer_dim"]
    H = CONFIG["transformer_hidden_dim"]
    nh, hd = CONFIG["num_head"], CONFIG["head_dim"]

    key = jax.random.PRNGKey(0)
    keys = jax.random.split(key, 16)

    def w(k, shape):
        return (0.02 * jax.random.normal(k, shape)).astype(jnp.float32)

    params = dict(
        ln1_g=jnp.ones((1, D), jnp.float32), ln1_b=jnp.zeros((1, D), jnp.float32),
        wq=w(keys[0], (D, nh * hd)), bq=w(keys[1], (1, nh * hd)),
        wk=w(keys[2], (D, nh * hd)), bk=w(keys[3], (1, nh * hd)),
        wv=w(keys[4], (D, nh * hd)), bv=w(keys[5], (1, nh * hd)),
        wo=w(keys[6], (nh * hd, D)), bo=w(keys[7], (1, D)),
        ln2_g=jnp.ones((1, D), jnp.float32), ln2_b=jnp.zeros((1, D), jnp.float32),
        w1=w(keys[8], (D, H)), b1=w(keys[9], (1, H)),
        w2=w(keys[10], (H, D)), b2=w(keys[11], (1, D)),
    )

    x = jax.random.normal(keys[12], (B, S, D), jnp.float32)
    # mask: 1 = valid token, 0 = padding (last two positions padded)
    mask = jnp.ones((B, S), jnp.float32).at[:, -2:].set(0.0)

    # Default: fp32 MXU operands (exact fidelity). On v6e/v7x one can pass
    # mxu_dtype=jnp.bfloat16 for faster matmuls with fp32 accumulation.
    out = transformer_layer(x, mask, params, num_head=nh, head_dim=hd)
    jax.block_until_ready(out)

    assert out.shape == (B, S, D) and out.dtype == jnp.float32
    assert bool(jnp.all(jnp.isfinite(out)))

    ref = _reference(x, mask, params, num_head=nh, head_dim=hd)
    max_err = float(jnp.max(jnp.abs(out - ref)))
    assert max_err < 5e-2, f"mismatch vs reference: max abs err = {max_err}"

    print("KERNEL_OK")
</pallas_src>

<mosaic_0001>
module attributes {stable_mosaic.version = 11 : i64} {
  func.func @transformer_layer_kernel(%arg0: memref<16x32xf32, #tpu.memory_space<vmem>>, %arg1: memref<2x8xf32, #tpu.memory_space<vmem>>, %arg2: memref<1x32xf32, #tpu.memory_space<vmem>>, %arg3: memref<1x32xf32, #tpu.memory_space<vmem>>, %arg4: memref<32x96xf32, #tpu.memory_space<vmem>>, %arg5: memref<1x96xf32, #tpu.memory_space<vmem>>, %arg6: memref<32x32xf32, #tpu.memory_space<vmem>>, %arg7: memref<1x32xf32, #tpu.memory_space<vmem>>, %arg8: memref<1x32xf32, #tpu.memory_space<vmem>>, %arg9: memref<1x32xf32, #tpu.memory_space<vmem>>, %arg10: memref<32x64xf32, #tpu.memory_space<vmem>>, %arg11: memref<1x64xf32, #tpu.memory_space<vmem>>, %arg12: memref<64x32xf32, #tpu.memory_space<vmem>>, %arg13: memref<1x32xf32, #tpu.memory_space<vmem>>, %arg14: memref<16x32xf32, #tpu.memory_space<vmem>>) attributes {dimension_semantics = [], scalar_prefetch = 0 : i64, scratch_operands = 0 : i64, tpu.core_type = #tpu.core_type<tc>} {
    %c0 = arith.constant 0 : index
    %c0_0 = arith.constant 0 : index
    %0 = vector.load %arg0[%c0, %c0_0] : memref<16x32xf32, #tpu.memory_space<vmem>>, vector<16x32xf32>
    %c0_1 = arith.constant 0 : index
    %c0_2 = arith.constant 0 : index
    %1 = vector.load %arg1[%c0_1, %c0_2] : memref<2x8xf32, #tpu.memory_space<vmem>>, vector<2x8xf32>
    %c0_3 = arith.constant 0 : index
    %c0_4 = arith.constant 0 : index
    %2 = vector.load %arg2[%c0_3, %c0_4] : memref<1x32xf32, #tpu.memory_space<vmem>>, vector<1x32xf32>
    %c0_5 = arith.constant 0 : index
    %c0_6 = arith.constant 0 : index
    %3 = vector.load %arg3[%c0_5, %c0_6] : memref<1x32xf32, #tpu.memory_space<vmem>>, vector<1x32xf32>
    %cst = arith.constant dense<0.000000e+00> : vector<16xf32>
    %4 = vector.multi_reduction <add>, %0, %cst [1] : vector<16x32xf32> to vector<16xf32>
    %5 = vector.shape_cast %4 : vector<16xf32> to vector<16x1xf32>
    %cst_7 = arith.constant 3.200000e+01 : f32
    %6 = vector.broadcast %cst_7 : f32 to vector<16x1xf32>
    %7 = arith.divf %5, %6 : vector<16x1xf32>
    %8 = vector.broadcast %7 : vector<16x1xf32> to vector<16x32xf32>
    %9 = arith.subf %0, %8 : vector<16x32xf32>
    %10 = arith.mulf %9, %9 : vector<16x32xf32>
    %cst_8 = arith.constant dense<0.000000e+00> : vector<16xf32>
    %11 = vector.multi_reduction <add>, %10, %cst_8 [1] : vector<16x32xf32> to vector<16xf32>
    %12 = vector.shape_cast %11 : vector<16xf32> to vector<16x1xf32>
    %cst_9 = arith.constant 3.200000e+01 : f32
    %13 = vector.broadcast %cst_9 : f32 to vector<16x1xf32>
    %14 = arith.divf %12, %13 : vector<16x1xf32>
    %15 = vector.broadcast %7 : vector<16x1xf32> to vector<16x32xf32>
    %16 = arith.subf %0, %15 : vector<16x32xf32>
    %cst_10 = arith.constant 9.99999974E-6 : f32
    %17 = vector.broadcast %cst_10 : f32 to vector<16x1xf32>
    %18 = arith.addf %14, %17 : vector<16x1xf32>
    %19 = math.rsqrt %18 : vector<16x1xf32>
    %20 = vector.broadcast %19 : vector<16x1xf32> to vector<16x32xf32>
    %21 = arith.mulf %16, %20 : vector<16x32xf32>
    %22 = vector.broadcast %2 : vector<1x32xf32> to vector<16x32xf32>
    %23 = arith.mulf %21, %22 : vector<16x32xf32>
    %24 = vector.broadcast %3 : vector<1x32xf32> to vector<16x32xf32>
    %25 = arith.addf %23, %24 : vector<16x32xf32>
    %c0_11 = arith.constant 0 : index
    %c0_12 = arith.constant 0 : index
    %26 = vector.load %arg4[%c0_11, %c0_12] : memref<32x96xf32, #tpu.memory_space<vmem>>, vector<32x96xf32>
    %cst_13 = arith.constant dense<0.000000e+00> : vector<16x96xf32>
    %27 = tpu.matmul %25, %26, %cst_13 {dimension_numbers = #tpu.dot_dimension_numbers<[1], [0], [0], [1], [0, 0, 1, 1], [], []>} : vector<16x32xf32>, vector<32x96xf32>, vector<16x96xf32> -> vector<16x96xf32>
    %c0_14 = arith.constant 0 : index
    %c0_15 = arith.constant 0 : index
    %28 = vector.load %arg5[%c0_14, %c0_15] : memref<1x96xf32, #tpu.memory_space<vmem>>, vector<1x96xf32>
    %29 = vector.broadcast %28 : vector<1x96xf32> to vector<16x96xf32>
    %30 = arith.addf %27, %29 : vector<16x96xf32>
    %c0_16 = arith.constant 0 : index
    %c0_17 = arith.constant 0 : index
    %31 = vector.load %arg6[%c0_16, %c0_17] : memref<32x32xf32, #tpu.memory_space<vmem>>, vector<32x32xf32>
    %cst_18 = arith.constant 1.000000e+00 : f32
    %32 = vector.broadcast %cst_18 : f32 to vector<2x8xf32>
    %33 = arith.subf %32, %1 : vector<2x8xf32>
    %cst_19 = arith.constant 1.000000e+06 : f32
    %34 = vector.broadcast %cst_19 : f32 to vector<2x8xf32>
    %35 = arith.mulf %34, %33 : vector<2x8xf32>
    %36 = vector.extract_strided_slice %30 {offsets = [0, 0], sizes = [8, 96], strides = [1, 1]} : vector<16x96xf32> to vector<8x96xf32>
    %37 = vector.extract_strided_slice %35 {offsets = [0, 0], sizes = [1, 8], strides = [1, 1]} : vector<2x8xf32> to vector<1x8xf32>
    %38 = vector.shape_cast %37 : vector<1x8xf32> to vector<1x8xf32>
    %39 = vector.broadcast %38 : vector<1x8xf32> to vector<8x8xf32>
    %cst_20 = arith.constant 0.000000e+00 : f32
    %40 = vector.broadcast %cst_20 : f32 to vector<8x32xf32>
    %41 = vector.extract_strided_slice %36 {offsets = [0, 0], sizes = [8, 16], strides = [1, 1]} : vector<8x96xf32> to vector<8x16xf32>
    %42 = vector.extract_strided_slice %36 {offsets = [0, 32], sizes = [8, 16], strides = [1, 1]} : vector<8x96xf32> to vector<8x16xf32>
    %43 = vector.extract_strided_slice %36 {offsets = [0, 64], sizes = [8, 16], strides = [1, 1]} : vector<8x96xf32> to vector<8x16xf32>
    %cst_21 = arith.constant dense<0.000000e+00> : vector<8x8xf32>
    %44 = tpu.matmul %41, %42, %cst_21 {dimension_numbers = #tpu.dot_dimension_numbers<[1], [1], [0], [0], [0, 0, 1, 0], [], []>} : vector<8x16xf32>, vector<8x16xf32>, vector<8x8xf32> -> vector<8x8xf32>
    %cst_22 = arith.constant 2.500000e-01 : f32
    %45 = vector.broadcast %cst_22 : f32 to vector<8x8xf32>
    %46 = arith.mulf %44, %45 : vector<8x8xf32>
    %47 = arith.subf %46, %39 : vector<8x8xf32>
    %cst_23 = arith.constant dense<0xFF800000> : vector<8xf32>
    %48 = vector.multi_reduction <maximumf>, %47, %cst_23 [1] : vector<8x8xf32> to vector<8xf32>
    %49 = vector.shape_cast %48 : vector<8xf32> to vector<8x1xf32>
    %50 = vector.broadcast %49 : vector<8x1xf32> to vector<8x8xf32>
    %51 = arith.subf %47, %50 : vector<8x8xf32>
    %52 = math.exp %51 : vector<8x8xf32>
    %cst_24 = arith.constant dense<0.000000e+00> : vector<8xf32>
    %53 = vector.multi_reduction <add>, %52, %cst_24 [1] : vector<8x8xf32> to vector<8xf32>
    %54 = vector.shape_cast %53 : vector<8xf32> to vector<8x1xf32>
    %55 = tpu.reciprocal %54 {approx = true} : vector<8x1xf32> -> vector<8x1xf32>
    %56 = vector.broadcast %55 : vector<8x1xf32> to vector<8x8xf32>
    %57 = arith.mulf %52, %56 : vector<8x8xf32>
    %cst_25 = arith.constant dense<0.000000e+00> : vector<8x16xf32>
    %58 = tpu.matmul %57, %43, %cst_25 {dimension_numbers = #tpu.dot_dimension_numbers<[1], [0], [0], [1], [0, 0, 1, 1], [], []>} : vector<8x8xf32>, vector<8x16xf32>, vector<8x16xf32> -> vector<8x16xf32>
    %59 = vector.extract_strided_slice %31 {offsets = [0, 0], sizes = [16, 32], strides = [1, 1]} : vector<32x32xf32> to vector<16x32xf32>
    %cst_26 = arith.constant dense<0.000000e+00> : vector<8x32xf32>
    %60 = tpu.matmul %58, %59, %cst_26 {dimension_numbers = #tpu.dot_dimension_numbers<[1], [0], [0], [1], [0, 0, 1, 1], [], []>} : vector<8x16xf32>, vector<16x32xf32>, vector<8x32xf32> -> vector<8x32xf32>
    %61 = arith.addf %40, %60 : vector<8x32xf32>
    %62 = vector.extract_strided_slice %36 {offsets = [0, 16], sizes = [8, 16], strides = [1, 1]} : vector<8x96xf32> to vector<8x16xf32>
    %63 = vector.extract_strided_slice %36 {offsets = [0, 48], sizes = [8, 16], strides = [1, 1]} : vector<8x96xf32> to vector<8x16xf32>
    %64 = vector.extract_strided_slice %36 {offsets = [0, 80], sizes = [8, 16], strides = [1, 1]} : vector<8x96xf32> to vector<8x16xf32>
    %cst_27 = arith.constant dense<0.000000e+00> : vector<8x8xf32>
    %65 = tpu.matmul %62, %63, %cst_27 {dimension_numbers = #tpu.dot_dimension_numbers<[1], [1], [0], [0], [0, 0, 1, 0], [], []>} : vector<8x16xf32>, vector<8x16xf32>, vector<8x8xf32> -> vector<8x8xf32>
    %cst_28 = arith.constant 2.500000e-01 : f32
    %66 = vector.broadcast %cst_28 : f32 to vector<8x8xf32>
    %67 = arith.mulf %65, %66 : vector<8x8xf32>
    %68 = arith.subf %67, %39 : vector<8x8xf32>
    %cst_29 = arith.constant dense<0xFF800000> : vector<8xf32>
    %69 = vector.multi_reduction <maximumf>, %68, %cst_29 [1] : vector<8x8xf32> to vector<8xf32>
    %70 = vector.shape_cast %69 : vector<8xf32> to vector<8x1xf32>
    %71 = vector.broadcast %70 : vector<8x1xf32> to vector<8x8xf32>
    %72 = arith.subf %68, %71 : vector<8x8xf32>
    %73 = math.exp %72 : vector<8x8xf32>
    %cst_30 = arith.constant dense<0.000000e+00> : vector<8xf32>
    %74 = vector.multi_reduction <add>, %73, %cst_30 [1] : vector<8x8xf32> to vector<8xf32>
    %75 = vector.shape_cast %74 : vector<8xf32> to vector<8x1xf32>
    %76 = tpu.reciprocal %75 {approx = true} : vector<8x1xf32> -> vector<8x1xf32>
    %77 = vector.broadcast %76 : vector<8x1xf32> to vector<8x8xf32>
    %78 = arith.mulf %73, %77 : vector<8x8xf32>
    %cst_31 = arith.constant dense<0.000000e+00> : vector<8x16xf32>
    %79 = tpu.matmul %78, %64, %cst_31 {dimension_numbers = #tpu.dot_dimension_numbers<[1], [0], [0], [1], [0, 0, 1, 1], [], []>} : vector<8x8xf32>, vector<8x16xf32>, vector<8x16xf32> -> vector<8x16xf32>
    %80 = vector.extract_strided_slice %31 {offsets = [16, 0], sizes = [16, 32], strides = [1, 1]} : vector<32x32xf32> to vector<16x32xf32>
    %cst_32 = arith.constant dense<0.000000e+00> : vector<8x32xf32>
    %81 = tpu.matmul %79, %80, %cst_32 {dimension_numbers = #tpu.dot_dimension_numbers<[1], [0], [0], [1], [0, 0, 1, 1], [], []>} : vector<8x16xf32>, vector<16x32xf32>, vector<8x32xf32> -> vector<8x32xf32>
    %82 = arith.addf %61, %81 : vector<8x32xf32>
    %83 = vector.extract_strided_slice %30 {offsets = [8, 0], sizes = [8, 96], strides = [1, 1]} : vector<16x96xf32> to vector<8x96xf32>
    %84 = vector.extract_strided_slice %35 {offsets = [1, 0], sizes = [1, 8], strides = [1, 1]} : vector<2x8xf32> to vector<1x8xf32>
    %85 = vector.shape_cast %84 : vector<1x8xf32> to vector<1x8xf32>
    %86 = vector.broadcast %85 : vector<1x8xf32> to vector<8x8xf32>
    %cst_33 = arith.constant 0.000000e+00 : f32
    %87 = vector.broadcast %cst_33 : f32 to vector<8x32xf32>
    %88 = vector.extract_strided_slice %83 {offsets = [0, 0], sizes = [8, 16], strides = [1, 1]} : vector<8x96xf32> to vector<8x16xf32>
    %89 = vector.extract_strided_slice %83 {offsets = [0, 32], sizes = [8, 16], strides = [1, 1]} : vector<8x96xf32> to vector<8x16xf32>
    %90 = vector.extract_strided_slice %83 {offsets = [0, 64], sizes = [8, 16], strides = [1, 1]} : vector<8x96xf32> to vector<8x16xf32>
    %cst_34 = arith.constant dense<0.000000e+00> : vector<8x8xf32>
    %91 = tpu.matmul %88, %89, %cst_34 {dimension_numbers = #tpu.dot_dimension_numbers<[1], [1], [0], [0], [0, 0, 1, 0], [], []>} : vector<8x16xf32>, vector<8x16xf32>, vector<8x8xf32> -> vector<8x8xf32>
    %cst_35 = arith.constant 2.500000e-01 : f32
    %92 = vector.broadcast %cst_35 : f32 to vector<8x8xf32>
    %93 = arith.mulf %91, %92 : vector<8x8xf32>
    %94 = arith.subf %93, %86 : vector<8x8xf32>
    %cst_36 = arith.constant dense<0xFF800000> : vector<8xf32>
    %95 = vector.multi_reduction <maximumf>, %94, %cst_36 [1] : vector<8x8xf32> to vector<8xf32>
    %96 = vector.shape_cast %95 : vector<8xf32> to vector<8x1xf32>
    %97 = vector.broadcast %96 : vector<8x1xf32> to vector<8x8xf32>
    %98 = arith.subf %94, %97 : vector<8x8xf32>
    %99 = math.exp %98 : vector<8x8xf32>
    %cst_37 = arith.constant dense<0.000000e+00> : vector<8xf32>
    %100 = vector.multi_reduction <add>, %99, %cst_37 [1] : vector<8x8xf32> to vector<8xf32>
    %101 = vector.shape_cast %100 : vector<8xf32> to vector<8x1xf32>
    %102 = tpu.reciprocal %101 {approx = true} : vector<8x1xf32> -> vector<8x1xf32>
    %103 = vector.broadcast %102 : vector<8x1xf32> to vector<8x8xf32>
    %104 = arith.mulf %99, %103 : vector<8x8xf32>
    %cst_38 = arith.constant dense<0.000000e+00> : vector<8x16xf32>
    %105 = tpu.matmul %104, %90, %cst_38 {dimension_numbers = #tpu.dot_dimension_numbers<[1], [0], [0], [1], [0, 0, 1, 1], [], []>} : vector<8x8xf32>, vector<8x16xf32>, vector<8x16xf32> -> vector<8x16xf32>
    %106 = vector.extract_strided_slice %31 {offsets = [0, 0], sizes = [16, 32], strides = [1, 1]} : vector<32x32xf32> to vector<16x32xf32>
    %cst_39 = arith.constant dense<0.000000e+00> : vector<8x32xf32>
    %107 = tpu.matmul %105, %106, %cst_39 {dimension_numbers = #tpu.dot_dimension_numbers<[1], [0], [0], [1], [0, 0, 1, 1], [], []>} : vector<8x16xf32>, vector<16x32xf32>, vector<8x32xf32> -> vector<8x32xf32>
    %108 = arith.addf %87, %107 : vector<8x32xf32>
    %109 = vector.extract_strided_slice %83 {offsets = [0, 16], sizes = [8, 16], strides = [1, 1]} : vector<8x96xf32> to vector<8x16xf32>
    %110 = vector.extract_strided_slice %83 {offsets = [0, 48], sizes = [8, 16], strides = [1, 1]} : vector<8x96xf32> to vector<8x16xf32>
    %111 = vector.extract_strided_slice %83 {offsets = [0, 80], sizes = [8, 16], strides = [1, 1]} : vector<8x96xf32> to vector<8x16xf32>
    %cst_40 = arith.constant dense<0.000000e+00> : vector<8x8xf32>
    %112 = tpu.matmul %109, %110, %cst_40 {dimension_numbers = #tpu.dot_dimension_numbers<[1], [1], [0], [0], [0, 0, 1, 0], [], []>} : vector<8x16xf32>, vector<8x16xf32>, vector<8x8xf32> -> vector<8x8xf32>
    %cst_41 = arith.constant 2.500000e-01 : f32
    %113 = vector.broadcast %cst_41 : f32 to vector<8x8xf32>
    %114 = arith.mulf %112, %113 : vector<8x8xf32>
    %115 = arith.subf %114, %86 : vector<8x8xf32>
    %cst_42 = arith.constant dense<0xFF800000> : vector<8xf32>
    %116 = vector.multi_reduction <maximumf>, %115, %cst_42 [1] : vector<8x8xf32> to vector<8xf32>
    %117 = vector.shape_cast %116 : vector<8xf32> to vector<8x1xf32>
    %118 = vector.broadcast %117 : vector<8x1xf32> to vector<8x8xf32>
    %119 = arith.subf %115, %118 : vector<8x8xf32>
    %120 = math.exp %119 : vector<8x8xf32>
    %cst_43 = arith.constant dense<0.000000e+00> : vector<8xf32>
    %121 = vector.multi_reduction <add>, %120, %cst_43 [1] : vector<8x8xf32> to vector<8xf32>
    %122 = vector.shape_cast %121 : vector<8xf32> to vector<8x1xf32>
    %123 = tpu.reciprocal %122 {approx = true} : vector<8x1xf32> -> vector<8x1xf32>
    %124 = vector.broadcast %123 : vector<8x1xf32> to vector<8x8xf32>
    %125 = arith.mulf %120, %124 : vector<8x8xf32>
    %cst_44 = arith.constant dense<0.000000e+00> : vector<8x16xf32>
    %126 = tpu.matmul %125, %111, %cst_44 {dimension_numbers = #tpu.dot_dimension_numbers<[1], [0], [0], [1], [0, 0, 1, 1], [], []>} : vector<8x8xf32>, vector<8x16xf32>, vector<8x16xf32> -> vector<8x16xf32>
    %127 = vector.extract_strided_slice %31 {offsets = [16, 0], sizes = [16, 32], strides = [1, 1]} : vector<32x32xf32> to vector<16x32xf32>
    %cst_45 = arith.constant dense<0.000000e+00> : vector<8x32xf32>
    %128 = tpu.matmul %126, %127, %cst_45 {dimension_numbers = #tpu.dot_dimension_numbers<[1], [0], [0], [1], [0, 0, 1, 1], [], []>} : vector<8x16xf32>, vector<16x32xf32>, vector<8x32xf32> -> vector<8x32xf32>
    %129 = arith.addf %108, %128 : vector<8x32xf32>
    %130 = tpu.concatenate %82, %129 in 0 : vector<8x32xf32>, vector<8x32xf32> -> vector<16x32xf32>
    %c0_46 = arith.constant 0 : index
    %c0_47 = arith.constant 0 : index
    %131 = vector.load %arg7[%c0_46, %c0_47] : memref<1x32xf32, #tpu.memory_space<vmem>>, vector<1x32xf32>
    %132 = vector.broadcast %131 : vector<1x32xf32> to vector<16x32xf32>
    %133 = arith.addf %130, %132 : vector<16x32xf32>
    %134 = arith.addf %0, %133 : vector<16x32xf32>
    %c0_48 = arith.constant 0 : index
    %c0_49 = arith.constant 0 : index
    %135 = vector.load %arg8[%c0_48, %c0_49] : memref<1x32xf32, #tpu.memory_space<vmem>>, vector<1x32xf32>
    %c0_50 = arith.constant 0 : index
    %c0_51 = arith.constant 0 : index
    %136 = vector.load %arg9[%c0_50, %c0_51] : memref<1x32xf32, #tpu.memory_space<vmem>>, vector<1x32xf32>
    %cst_52 = arith.constant dense<0.000000e+00> : vector<16xf32>
    %137 = vector.multi_reduction <add>, %134, %cst_52 [1] : vector<16x32xf32> to vector<16xf32>
    %138 = vector.shape_cast %137 : vector<16xf32> to vector<16x1xf32>
    %cst_53 = arith.constant 3.200000e+01 : f32
    %139 = vector.broadcast %cst_53 : f32 to vector<16x1xf32>
    %140 = arith.divf %138, %139 : vector<16x1xf32>
    %141 = vector.broadcast %140 : vector<16x1xf32> to vector<16x32xf32>
    %142 = arith.subf %134, %141 : vector<16x32xf32>
    %143 = arith.mulf %142, %142 : vector<16x32xf32>
    %cst_54 = arith.constant dense<0.000000e+00> : vector<16xf32>
    %144 = vector.multi_reduction <add>, %143, %cst_54 [1] : vector<16x32xf32> to vector<16xf32>
    %145 = vector.shape_cast %144 : vector<16xf32> to vector<16x1xf32>
    %cst_55 = arith.constant 3.200000e+01 : f32
    %146 = vector.broadcast %cst_55 : f32 to vector<16x1xf32>
    %147 = arith.divf %145, %146 : vector<16x1xf32>
    %148 = vector.broadcast %140 : vector<16x1xf32> to vector<16x32xf32>
    %149 = arith.subf %134, %148 : vector<16x32xf32>
    %cst_56 = arith.constant 9.99999974E-6 : f32
    %150 = vector.broadcast %cst_56 : f32 to vector<16x1xf32>
    %151 = arith.addf %147, %150 : vector<16x1xf32>
    %152 = math.rsqrt %151 : vector<16x1xf32>
    %153 = vector.broadcast %152 : vector<16x1xf32> to vector<16x32xf32>
    %154 = arith.mulf %149, %153 : vector<16x32xf32>
    %155 = vector.broadcast %135 : vector<1x32xf32> to vector<16x32xf32>
    %156 = arith.mulf %154, %155 : vector<16x32xf32>
    %157 = vector.broadcast %136 : vector<1x32xf32> to vector<16x32xf32>
    %158 = arith.addf %156, %157 : vector<16x32xf32>
    %c0_57 = arith.constant 0 : index
    %c0_58 = arith.constant 0 : index
    %159 = vector.load %arg10[%c0_57, %c0_58] : memref<32x64xf32, #tpu.memory_space<vmem>>, vector<32x64xf32>
    %cst_59 = arith.constant dense<0.000000e+00> : vector<16x64xf32>
    %160 = tpu.matmul %158, %159, %cst_59 {dimension_numbers = #tpu.dot_dimension_numbers<[1], [0], [0], [1], [0, 0, 1, 1], [], []>} : vector<16x32xf32>, vector<32x64xf32>, vector<16x64xf32> -> vector<16x64xf32>
    %c0_60 = arith.constant 0 : index
    %c0_61 = arith.constant 0 : index
    %161 = vector.load %arg11[%c0_60, %c0_61] : memref<1x64xf32, #tpu.memory_space<vmem>>, vector<1x64xf32>
    %162 = vector.broadcast %161 : vector<1x64xf32> to vector<16x64xf32>
    %163 = arith.addf %160, %162 : vector<16x64xf32>
    %cst_62 = arith.constant 5.000000e-01 : f32
    %164 = vector.broadcast %cst_62 : f32 to vector<16x64xf32>
    %165 = arith.mulf %164, %163 : vector<16x64xf32>
    %cst_63 = arith.constant 0.707106769 : f32
    %166 = vector.broadcast %cst_63 : f32 to vector<16x64xf32>
    %167 = arith.mulf %163, %166 : vector<16x64xf32>
    %168 = math.erf %167 : vector<16x64xf32>
    %cst_64 = arith.constant 1.000000e+00 : f32
    %169 = vector.broadcast %cst_64 : f32 to vector<16x64xf32>
    %170 = arith.addf %169, %168 : vector<16x64xf32>
    %171 = arith.mulf %165, %170 : vector<16x64xf32>
    %c0_65 = arith.constant 0 : index
    %c0_66 = arith.constant 0 : index
    %172 = vector.load %arg12[%c0_65, %c0_66] : memref<64x32xf32, #tpu.memory_space<vmem>>, vector<64x32xf32>
    %cst_67 = arith.constant dense<0.000000e+00> : vector<16x32xf32>
    %173 = tpu.matmul %171, %172, %cst_67 {dimension_numbers = #tpu.dot_dimension_numbers<[1], [0], [0], [1], [0, 0, 1, 1], [], []>} : vector<16x64xf32>, vector<64x32xf32>, vector<16x32xf32> -> vector<16x32xf32>
    %c0_68 = arith.constant 0 : index
    %c0_69 = arith.constant 0 : index
    %174 = vector.load %arg13[%c0_68, %c0_69] : memref<1x32xf32, #tpu.memory_space<vmem>>, vector<1x32xf32>
    %175 = vector.broadcast %174 : vector<1x32xf32> to vector<16x32xf32>
    %176 = arith.addf %173, %175 : vector<16x32xf32>
    %177 = arith.addf %134, %176 : vector<16x32xf32>
    %c0_70 = arith.constant 0 : index
    %c0_71 = arith.constant 0 : index
    %178 = vector.load %arg14[%c0_70, %c0_71] : memref<16x32xf32, #tpu.memory_space<vmem>>, vector<16x32xf32>
    tpu.vector_store %arg14[%c0_70, %c0_71], %177 {strides = array<i32>} : memref<16x32xf32, #tpu.memory_space<vmem>>, vector<16x32xf32>,
    return
  }
}

</mosaic_0001>

<bundles_post_ra>
// kernel: tpu_custom_call.1
= control target key start
LH: loop header
LB: loop body
LE: loop exit
PB: predicated region body
PF: predicated region fallthrough
CT: control target
= control target key end

     0   :  { %19 = vsyncpa [#allocation3], 0  ;;  %s2101_s0 = inlined_call_operand.hbm [shape: f32[16,32], index: 0, kind: input, shape index: {}]   ;;  %s2102_s1 = inlined_call_operand.vmem [shape: f32[2,8], index: 1, kind: input, shape index: {}]   ;;  %s2103_s2 = inlined_call_operand.vmem [shape: f32[1,32], index: 2, kind: input, shape index: {}]   ;;  %s2104_s3 = inlined_call_operand.vmem [shape: f32[1,32], index: 3, kind: input, shape index: {}]   ;;  %s2105_s4 = inlined_call_operand.vmem [shape: f32[32,96], index: 4, kind: input, shape index: {}]   ;;  %s2106_s5 = inlined_call_operand.vmem [shape: f32[1,96], index: 5, kind: input, shape index: {}]   ;;  %s2107_s6 = inlined_call_operand.vmem [shape: f32[32,32], index: 6, kind: input, shape index: {}]   ;;  %s2108_s7 = inlined_call_operand.vmem [shape: f32[1,32], index: 7, kind: input, shape index: {}]   ;;  %s2109_s8 = inlined_call_operand.vmem [shape: f32[1,32], index: 8, kind: input, shape index: {}]   ;;  %s2110_s9 = inlined_call_operand.vmem [shape: f32[1,32], index: 9, kind: input, shape index: {}]   ;;  %s2111_s10 = inlined_call_operand.vmem [shape: f32[32,64], index: 10, kind: input, shape index: {}]   ;;  %s2112_s11 = inlined_call_operand.vmem [shape: f32[1,64], index: 11, kind: input, shape index: {}]   ;;  %s2113_s12 = inlined_call_operand.vmem [shape: f32[64,32], index: 12, kind: input, shape index: {}]   ;;  %s2114_s13 = inlined_call_operand.vmem [shape: f32[1,32], index: 13, kind: input, shape index: {}]   ;;  %s2115_s14 = inlined_call_operand.hbm [shape: f32[16,32], index: 14, kind: output, shape index: {}]  }
   0x1   :  { %20 = vsyncpa [#allocation4], 0  ;;  %s1773_s29 = smov [#allocation2]   ;;  %s1725_s17 = scalar_lea.hbm %s2101_s0, 256 }
   0x2   :  { %s26_s30 = sshll.u32 %s1773_s29, 4  ;;  %p1726_p0 = scmp.ne.s32.totalorder %s2101_s0, %s1725_s17  ;;  %s27_s30 = int_to_ptr.vmem [resolvable:$true] %s26_s30 }
   0x3   :  { %p1729_p1 = scmp.lt.u32.totalorder %s1725_s17, %s2101_s0 }
   0x5   :  { %p1731_p2 = pnand %p1729_p1, %p1726_p0 }
   0x7   :  { %1734 = shalt.err (!%p1731_p2)
}
   0x8   :  { %s1735_s22 = scalar_lea.vmem %s27_s30, 256  ;;  %p1740_p4 = scmp.lt.s32.totalorder %s27_s30, %s27_s30 }
   0x9   :  { %p1736_p3 = scmp.ne.s32.totalorder %s27_s30, %s1735_s22  ;;  %p1741_p5 = scmp.lt.s32.totalorder %s1735_s22, %s1735_s22 }
   0xb   :  { %p1742_p6 = por %p1741_p5, %p1740_p4 }
   0xd   :  { %p1743_p7 = pnand %p1742_p6, %p1736_p3 }
   0xf   :  { %1746 = shalt.err (!%p1743_p7)
}
  0x10   :  { %s1774_s23 = smov 128   ;;  %s1775_s24 = smov 8  }
  0x11   :  { %32 = dma.hbm_to_vmem [thread:$0]  %s2101_s0, 256, %s27_s30, [#allocation3], %s1774_s23, %s1774_s23, %s1775_s24  }
  0x12   :  { %1769 = dma.done.wait [#allocation3], 256  }
  0x13   :  { %1770 = vsyncadd [#allocation3], 4294967040  ;;  %vm67_vm0 = vcmask 261120   ;;  %v1875_v0 = vld [vmem:[#allocation2] sm:$0xff]  ;;  %v1877_v1 = vld [vmem:[#allocation2 + $0x8] sm:$0xff]  ;;  %v1776_v36 = vmov 0.0   ;;  %v209_v45 = vlaneseq }
  0x14   :  { %v68_v2 = vsel %vm67_vm0, %v1875_v0, 0.0  ;;  %v71_v3 = vsel %vm67_vm0, %v1877_v1, 0.0  ;;  %v111_v14 = vld [vmem:[%s2105_s4] sm:$0xff]  ;;  %v112_v15 = vld [vmem:[%s2105_s4 + $0x8] sm:$0xff]  ;;  %v113_v16 = vld [vmem:[%s2105_s4 + $0x10] sm:$0xff]  ;;  %1548 = vmatprep.subr.mxu1 %v1776_v36  ;;  %vm1777_vm1 = vmmov 0  }
  0x15   :  { %69 = vadd.xlane.f32.xlu0 %v68_v2  ;;  %v1641_v17 = vpack.c.bf16 %v112_v15, %v111_v14  ;;  %v114_v18 = vld [vmem:[%s2105_s4 + $0x18] sm:$0xff]  ;;  %v1452_v27 = vld [vmem:[%s2103_s2] ss:$0 sm:$0xff]  ;;  %1550 = vmatprep.mubr.msk.f32.mxu1 %vm1777_vm1, %v1776_v36  ;;  %s1778_s21 = smov 80   ;;  %s1779_s22 = smov 96   ;;  %vm216_vm2 = vcmask 130048  }
  0x16   :  { %v1645_v19 = vpack.c.bf16 %v114_v18, %v113_v16  ;;  %v1453_v29 = vld [vmem:[%s2104_s3] ss:$0 sm:$0xff]  ;;  %s1780_s25 = smov 112   ;;  %v1933_v48 = vshrl.u32 %v209_v45, 7  ;;  %vm293_vm3 = vcmask 64512   ;;  %s1782_s0 = smov 48  }
  0x17   :  { %1642 = vmatprep.subr.bf16.mxu0 %v1641_v17  ;;  %v1454_v37 = vld [vmem:[%s2106_s5] ss:$0 sm:$0xff]  ;;  %vm1349_vm4 = vcmask 523264  }
  0x18   :  { %1644 = vmatpush3.bf16.msra.mxu0 %v1641_v17  ;;  %v64_v46 = vld [vmem:[%s2102_s1] sm:$0x3]  ;;  %v211_v50 = vsub.s32 0, %v1933_v48  ;;  %s1781_s1 = smov 64  }
  0x19   :  { %72 = vadd.xlane.f32.xlu0 %v71_v3  ;;  %1646 = vmatprep.subr.bf16.mxu0 %v1645_v19  ;;  %v207_v47 = vsub.f32 1.0, %v64_v46 }
  0x1b   :  { %v1935_v49 = vmul.f32 1000000.0, %v207_v47 }
  0x1c   :  { %1648 = vmatpush3.bf16.msra.mxu0 %v1645_v19  ;;  %v203_v19 = vld [vmem:[%s2107_s6] sm:$0xff] }
  0x1d   :  { %1543 = vmatprep.subr.mxu0 %v1776_v36  ;;  %v212_v51 = vrot.slane %v1935_v49, %v211_v50 }
  0xa2   :  { %v70_v4 = vpop.xlane.xlu0 %69 }
  0xa3   :  { %v75_v5 = vmul.f32 0.03125, %v70_v4 }
  0xa5   :  { %v77_v6 = vsub.f32 %v1875_v0, %v75_v5 }
  0xa6   :  { %v73_v7 = vpop.xlane.xlu0 %72 }
  0xa7   :  { %v76_v8 = vmul.f32 0.03125, %v73_v7  ;;  %v79_v9 = vmul.f32 %v77_v6, %v77_v6 }
  0xa9   :  { %v78_v10 = vsub.f32 %v1877_v1, %v76_v8  ;;  %v81_v11 = vsel %vm67_vm0, %v79_v9, 0.0 }
  0xaa   :  { %82 = vadd.xlane.f32.xlu1 %v81_v11  ;;  %v205_v11 = vld [vmem:[%s2107_s6 + $0x10] sm:$0xff] }
  0xab   :  { %v80_v12 = vmul.f32 %v78_v10, %v78_v10 }
  0xad   :  { %v84_v13 = vsel %vm67_vm0, %v80_v12, 0.0  ;;  %v206_v12 = vld [vmem:[%s2107_s6 + $0x18] sm:$0xff] }
  0xae   :  { %85 = vadd.xlane.f32.xlu1 %v84_v13  ;;  %v1783_v13 = vmov 0.0|0.0   ;;  %v1650_v14 = vpack.c.bf16 %v206_v12, %v205_v11 }
 0x137   :  { %v83_v20 = vpop.xlane.xlu1 %82 }
 0x138   :  { %v87_v21 = vmul.f32 0.03125, %v83_v20  ;;  %v204_v20 = vld [vmem:[%s2107_s6 + $0x8] sm:$0xff] }
 0x13a   :  { %v89_v22 = vadd.f32 1e-05, %v87_v21 }
 0x13b   :  { %v86_v23 = vpop.xlane.xlu1 %85 }
 0x13c   :  { %1697 = vrsqrt.f32 %v89_v22  ;;  %v88_v24 = vmul.f32 0.03125, %v86_v23  ;;  %v1969_v23 = vpack.c.bf16 %v204_v20, %v203_v19 }
 0x13e   :  { %v90_v25 = vadd.f32 1e-05, %v88_v24 }
 0x140   :  { %1699 = vrsqrt.f32 %v90_v25 }
 0x146   :  { %v1698_v26 = vpop.eup %1697 }
 0x147   :  { %v93_v28 = vmul.f32 %v1698_v26, %v77_v6 }
 0x149   :  { %v101_v30 = vmul.f32 %v1452_v27, %v93_v28 }
 0x14a   :  { %v1700_v31 = vpop.eup %1699 }
 0x14b   :  { %v94_v32 = vmul.f32 %v1700_v31, %v78_v10  ;;  %v109_v33 = vadd.f32 %v1453_v29, %v101_v30 }
 0x14d   :  { %v102_v34 = vmul.f32 %v1452_v27, %v94_v32  ;;  %1540 = vmatprep.mubr.msk.f32.mxu0 %vm67_vm0, %v109_v33 }
 0x14f   :  { %v110_v35 = vadd.f32 %v1453_v29, %v102_v34  ;;  %v696_v34 = vsub.s32 1, %v1933_v48  ;;  %v1473_v48 = vld [vmem:[%s2108_s7] ss:$0 sm:$0xff] }
 0x151   :  { %1541 = vmatmul.mubr.msk.f32.vlgmr.msra.gmra.mrb[0].mxu0 %vm67_vm0, %v110_v35 }
 0x152   :  { %1545 = vmatprep.mubr.msk.f32.mxu0 %vm1777_vm1, %v1776_v36 }
 0x224   :  { %v1542_v38 = vpop.f32.mrb[0].mxu0 }
 0x225   :  { %v1916_v39 = vadd.f32 %v1542_v38, %v1454_v37  ;;  %v194_v40 = vpop.f32.mrb[1].mxu0 }
 0x226   :  { %v195_v41 = vadd.f32 %v1454_v37, %v194_v40  ;;  %v697_v40 = vrot.slane %v1935_v49, %v696_v34 }
 0x228   :  { %383 = vrot.lane.b32.xlu1 %v195_v41, %s1778_s21  ;;  %214 = vrot.lane.b32.xlu0 %v195_v41, %s1779_s22 }
 0x22c   :  { %381 = vrot.lane.b32.xlu1 %v195_v41, %s1780_s25 }
 0x29a   :  { %v215_v42 = vpop.permute.xlu0 %214  ;;  %v384_v43 = vpop.permute.xlu1 %383 }
 0x29b   :  { %1544 = vmatpush3.xpose.msk.msra.mxu0 %vm216_vm2, %v215_v42 }
 0x29c   :  { %1553 = vmatprep.subr.mxu0 %v1776_v36 }
 0x29e   :  { %1546 = vmatmul.mubr.msk.f32.vlgmr.msra.gmra.mrb[2].mxu0 %vm216_vm2, %v195_v41  ;;  %v382_v44 = vpop.permute.xlu1 %381 }
 0x29f   :  { %1554 = vmatpush3.xpose.msk.msra.mxu0 %vm216_vm2, %v384_v43  ;;  %1555 = vmatprep.mubr.msk.f32.mxu0 %vm1777_vm1, %v1776_v36 }
 0x2a0   :  { %1649 = vmatprep.subr.bf16.mxu0 %v1783_v13 }
 0x2a2   :  { %1556 = vmatmul.mubr.msk.f32.vlgmr.msra.gmra.mrb[4].mxu0 %vm216_vm2, %v382_v44 }
 0x2a3   :  { %1567 = vmatprep.mubr.msk.f32.mxu0 %vm1777_vm1, %v1776_v36  ;;  %1651 = vmatpush3.bf16.msra.mxu0 %v1650_v14 }
 0x2a4   :  { %1577 = vmatprep.subr.mxu0 %v1776_v36 }
 0x371   :  { %v287_v52 = vpop.f32.mrb[2].mxu0 }
 0x372   :  { %v291_v53 = vmul.f32 0.25, %v287_v52  ;;  %v1547_v54 = vpop.f32.mrb[3].mxu0 }
 0x374   :  { %v292_v55 = vsub.f32 %v291_v53, %v212_v51 }
 0x375   :  { %v455_v56 = vpop.f32.mrb[4].mxu0 }
 0x376   :  { %v459_v57 = vmul.f32 0.25, %v455_v56  ;;  %v1557_v58 = vpop.f32.mrb[5].mxu0  ;;  %v294_v59 = vsel %vm293_vm3, %v292_v55, -inf }
 0x377   :  { %295 = vmax.xlane.f32.xlu1 %v294_v59 }
 0x378   :  { %v460_v60 = vsub.f32 %v459_v57, %v212_v51 }
 0x37a   :  { %v461_v61 = vsel %vm293_vm3, %v460_v60, -inf }
 0x37b   :  { %462 = vmax.xlane.f32.xlu0 %v461_v61 }
 0x388   :  { %305 = vrot.lane.b32.xlu1 %v195_v41, %s1781_s1 }
 0x38c   :  { %699 = vrot.lane.b32.xlu1 %v1916_v39, %s1779_s22 }
 0x390   :  { %866 = vrot.lane.b32.xlu1 %v1916_v39, %s1778_s21  ;;  %s1784_s21 = smov [#allocation5]  }
 0x391   :  { %s1440_s22 = sshll.u32 %s1784_s21, 4  ;;  %s1441_s22 = int_to_ptr.vmem [resolvable:$true] %s1440_s22 }
 0x392   :  { %p1752_p9 = scmp.lt.s32.totalorder %s1441_s22, %s1441_s22 }
 0x394   :  { %864 = vrot.lane.b32.xlu1 %v1916_v39, %s1780_s25  ;;  %s1747_s25 = scalar_lea.vmem %s1441_s22, 256 }
 0x395   :  { %p1748_p8 = scmp.ne.s32.totalorder %s1441_s22, %s1747_s25  ;;  %p1753_p10 = scmp.lt.s32.totalorder %s1747_s25, %s1747_s25 }
 0x397   :  { %p1754_p11 = por %p1753_p10, %p1752_p9 }
 0x399   :  { %p1755_p12 = pnand %p1754_p11, %p1748_p8 }
 0x404   :  { %v296_v62 = vpop.xlane.xlu1 %295 }
 0x405   :  { %v297_v63 = vsub.f32 %v292_v55, %v296_v62 }
 0x407   :  { %v298_v2 = vmul.f32 1.442695, %v297_v63 }
 0x408   :  { %v306_v3 = vpop.permute.xlu1 %305  ;;  %v463_v4 = vpop.xlane.xlu0 %462 }
 0x409   :  { %1701 = vpow2.f32 %v298_v2  ;;  %v464_v5 = vsub.f32 %v460_v60, %v463_v4  ;;  %1549 = vmatpush3.msra.mxu1 %v306_v3 }
 0x40a   :  { %1558 = vmatprep.subr.mxu1 %v1776_v36 }
 0x40b   :  { %v465_v6 = vmul.f32 1.442695, %v464_v5 }
 0x40c   :  { %v700_v25 = vpop.permute.xlu1 %699 }
 0x40d   :  { %1703 = vpow2.f32 %v465_v6 }
 0x410   :  { %v867_v30 = vpop.permute.xlu1 %866 }
 0x413   :  { %v1702_v7 = vpop.eup %1701 }
 0x414   :  { %v300_v8 = vsel %vm293_vm3, %v1702_v7, 0.0  ;;  %v865_v31 = vpop.permute.xlu1 %864 }
 0x415   :  { %301 = vadd.xlane.f32.xlu0 %v300_v8 }
 0x417   :  { %v1704_v9 = vpop.eup %1703 }
 0x418   :  { %v467_v10 = vsel %vm293_vm3, %v1704_v9, 0.0 }
 0x419   :  { %468 = vadd.xlane.f32.xlu0 %v467_v10 }
 0x42f   :  { %472 = vrot.lane.b32.xlu0 %v195_v41, %s1782_s0 }
 0x4a2   :  { %v302_v15 = vpop.xlane.xlu0 %301 }
 0x4a3   :  { %1705 = vrcp.f32 %v302_v15 }
 0x4a6   :  { %v469_v16 = vpop.xlane.xlu0 %468 }
 0x4a7   :  { %1707 = vrcp.f32 %v469_v16 }
 0x4aa   :  { %v473_v21 = vpop.permute.xlu0 %472 }
 0x4ad   :  { %v1706_v17 = vpop.eup %1705 }
 0x4ae   :  { %v304_v18 = vmul.f32 %v1706_v17, %v1702_v7 }
 0x4b0   :  { %1551 = vmatmul.mubr.msk.f32.vlgmr.msra.gmra.mrb[0].mxu1 %vm293_vm3, %v304_v18 }
 0x4b1   :  { %v1708_v22 = vpop.eup %1707  ;;  %1559 = vmatpush3.msra.mxu1 %v473_v21  ;;  %1560 = vmatprep.mubr.msk.f32.mxu1 %vm1777_vm1, %v1776_v36 }
 0x4b2   :  { %v471_v24 = vmul.f32 %v1708_v22, %v1704_v9  ;;  %1652 = vmatprep.subr.bf16.mxu1 %v1783_v13 }
 0x4b4   :  { %1561 = vmatmul.mubr.msk.f32.vlgmr.msra.gmra.mrb[2].mxu1 %vm293_vm3, %v471_v24 }
 0x4b5   :  { %1654 = vmatpush3.bf16.msra.mxu1 %v1969_v23  ;;  %1574 = vmatprep.mubr.msk.f32.mxu1 %vm1777_vm1, %v1776_v36 }
 0x4b6   :  { %1582 = vmatprep.subr.mxu1 %v1776_v36 }
 0x583   :  { %v377_v26 = vpop.f32.mrb[0].mxu1 }
 0x584   :  { %v1552_v27 = vpop.f32.mrb[1].mxu1  ;;  %1575 = vmatmul.mubr.msk.f32.vlgmr.msra.gmra.mrb[4].mxu1 %vm216_vm2, %v377_v26 }
 0x585   :  { %1584 = vmatprep.mubr.msk.f32.mxu1 %vm1777_vm1, %v1776_v36 }
 0x587   :  { %v544_v28 = vpop.f32.mrb[2].mxu1 }
 0x588   :  { %v1562_v29 = vpop.f32.mrb[3].mxu1  ;;  %1568 = vmatmul.mubr.msk.f32.vlgmr.msra.gmra.mrb[6].mxu0 %vm216_vm2, %v544_v28 }
 0x589   :  { %1578 = vmatpush3.xpose.msk.msra.mxu0 %vm216_vm2, %v700_v25  ;;  %1579 = vmatprep.mubr.msk.f32.mxu0 %vm1777_vm1, %v1776_v36 }
 0x58a   :  { %1587 = vmatprep.subr.mxu0 %v1776_v36 }
 0x58c   :  { %1580 = vmatmul.mubr.msk.f32.vlgmr.msra.gmra.mrb[8].mxu0 %vm216_vm2, %v1916_v39 }
 0x58d   :  { %1588 = vmatpush3.xpose.msk.msra.mxu0 %vm216_vm2, %v867_v30  ;;  %1589 = vmatprep.mubr.msk.f32.mxu0 %vm1777_vm1, %v1776_v36 }
 0x58e   :  { %1655 = vmatprep.subr.bf16.mxu0 %v1783_v13 }
 0x590   :  { %1590 = vmatmul.mubr.msk.f32.vlgmr.msra.gmra.mrb[10].mxu0 %vm216_vm2, %v865_v31 }
 0x591   :  { %1657 = vmatpush3.bf16.msra.mxu0 %v1650_v14  ;;  %1601 = vmatprep.mubr.msk.f32.mxu0 %vm1777_vm1, %v1776_v36 }
 0x657   :  { %v690_v32 = vpop.f32.mrb[4].mxu1 }
 0x658   :  { %v1576_v33 = vpop.f32.mrb[5].mxu1 }
 0x659   :  { %v1474_v33 = vld [vmem:[%s2109_s8] ss:$0 sm:$0xff] }
 0x65b   :  { %v617_v35 = vpop.f32.mrb[6].mxu0 }
 0x65c   :  { %v691_v37 = vadd.f32 %v690_v32, %v617_v35  ;;  %v1569_v38 = vpop.f32.mrb[7].mxu0  ;;  %v1475_v35 = vld [vmem:[%s2110_s9] ss:$0 sm:$0xff] }
 0x65e   :  { %v1184_v49 = vadd.f32 %v1473_v48, %v691_v37 }
 0x65f   :  { %v771_v41 = vpop.f32.mrb[8].mxu0 }
 0x660   :  { %v775_v42 = vmul.f32 0.25, %v771_v41  ;;  %v1581_v43 = vpop.f32.mrb[9].mxu0  ;;  %v2004_v53 = vadd.f32 %v1184_v49, %v1875_v0  ;;  %v1233_v41 = vld [vmem:[%s2111_s10 + $0x8] sm:$0xff] }
 0x661   :  { %v1234_v43 = vld [vmem:[%s2111_s10 + $0x10] sm:$0xff] }
 0x662   :  { %v776_v44 = vsub.f32 %v775_v42, %v697_v40  ;;  %v1190_v54 = vsel %vm67_vm0, %v2004_v53, 0.0 }
 0x663   :  { %v938_v45 = vpop.f32.mrb[10].mxu0 }
 0x664   :  { %v942_v46 = vmul.f32 0.25, %v938_v45  ;;  %v1591_v47 = vpop.f32.mrb[11].mxu0  ;;  %v777_v50 = vsel %vm293_vm3, %v776_v44, -inf }
 0x665   :  { %778 = vmax.xlane.f32.xlu0 %v777_v50 }
 0x666   :  { %v943_v51 = vsub.f32 %v942_v46, %v697_v40  ;;  %v1232_v40 = vld [vmem:[%s2111_s10] sm:$0xff] }
 0x667   :  { %v1661_v42 = vpack.c.bf16 %v1233_v41, %v1232_v40 }
 0x668   :  { %v944_v52 = vsel %vm293_vm3, %v943_v51, -inf }
 0x669   :  { %945 = vmax.xlane.f32.xlu1 %v944_v52  ;;  %1662 = vmatprep.subr.bf16.mxu0 %v1661_v42 }
 0x67a   :  { %955 = vrot.lane.b32.xlu1 %v1916_v39, %s1782_s0 }
 0x69e   :  { %1191 = vadd.xlane.f32.xlu1 %v1190_v54  ;;  %v1334_v54 = vld [vmem:[%s2113_s12] sm:$0xff] }
 0x6f2   :  { %v779_v55 = vpop.xlane.xlu0 %778 }
 0x6f3   :  { %v780_v56 = vsub.f32 %v776_v44, %v779_v55  ;;  %v1235_v44 = vld [vmem:[%s2111_s10 + $0x18] sm:$0xff]  ;;  %v1335_v55 = vld [vmem:[%s2113_s12 + $0x8] sm:$0xff] }
 0x6f4   :  { %v1665_v45 = vpack.c.bf16 %v1235_v44, %v1234_v43 }
 0x6f5   :  { %v781_v57 = vmul.f32 1.442695, %v780_v56  ;;  %v1669_v56 = vpack.c.bf16 %v1335_v55, %v1334_v54 }
 0x6f6   :  { %v946_v58 = vpop.xlane.xlu1 %945 }
 0x6f7   :  { %1709 = vpow2.f32 %v781_v57  ;;  %v947_v59 = vsub.f32 %v943_v51, %v946_v58  ;;  %v1336_v57 = vld [vmem:[%s2113_s12 + $0x10] sm:$0xff]  ;;  %v1337_v58 = vld [vmem:[%s2113_s12 + $0x18] sm:$0xff] }
 0x6f9   :  { %v948_v60 = vmul.f32 1.442695, %v947_v59  ;;  %v1673_v59 = vpack.c.bf16 %v1337_v58, %v1336_v57 }
 0x6fa   :  { %v956_v7 = vpop.permute.xlu1 %955 }
 0x6fb   :  { %1711 = vpow2.f32 %v948_v60  ;;  %v1338_v60 = vld [vmem:[%s2113_s12 + $0x20] sm:$0xff] }
 0x701   :  { %v1710_v61 = vpop.eup %1709 }
 0x702   :  { %v783_v62 = vsel %vm293_vm3, %v1710_v61, 0.0 }
 0x703   :  { %784 = vadd.xlane.f32.xlu0 %v783_v62 }
 0x705   :  { %v1712_v63 = vpop.eup %1711 }
 0x706   :  { %v950_v0 = vsel %vm293_vm3, %v1712_v63, 0.0 }
 0x707   :  { %951 = vadd.xlane.f32.xlu0 %v950_v0  ;;  %v1341_v0 = vld [vmem:[%s2113_s12 + $0x38] sm:$0xff] }
 0x71d   :  { %788 = vrot.lane.b32.xlu0 %v1916_v39, %s1781_s1 }
 0x72b   :  { %v1192_v14 = vpop.xlane.xlu1 %1191 }
 0x72c   :  { %v1196_v17 = vmul.f32 0.03125, %v1192_v14 }
 0x72e   :  { %v1198_v20 = vsub.f32 %v2004_v53, %v1196_v17 }
 0x790   :  { %v785_v2 = vpop.xlane.xlu0 %784 }
 0x791   :  { %1713 = vrcp.f32 %v785_v2 }
 0x794   :  { %v952_v3 = vpop.xlane.xlu0 %951 }
 0x795   :  { %1715 = vrcp.f32 %v952_v3  ;;  %v1476_v3 = vld [vmem:[%s2112_s11] ss:$0 sm:$0xff] }
 0x798   :  { %v789_v4 = vpop.permute.xlu0 %788 }
 0x799   :  { %1583 = vmatpush3.msra.mxu1 %v789_v4 }
 0x79a   :  { %1592 = vmatprep.subr.mxu1 %v1776_v36 }
 0x79b   :  { %v1714_v5 = vpop.eup %1713 }
 0x79c   :  { %v787_v6 = vmul.f32 %v1714_v5, %v1710_v61  ;;  %v1339_v61 = vld [vmem:[%s2113_s12 + $0x28] sm:$0xff] }
 0x79d   :  { %v1677_v62 = vpack.c.bf16 %v1339_v61, %v1338_v60 }
 0x79e   :  { %1585 = vmatmul.mubr.msk.f32.vlgmr.msra.gmra.mrb[6].mxu1 %vm293_vm3, %v787_v6 }
 0x79f   :  { %v1716_v8 = vpop.eup %1715  ;;  %1593 = vmatpush3.msra.mxu1 %v956_v7  ;;  %1594 = vmatprep.mubr.msk.f32.mxu1 %vm1777_vm1, %v1776_v36 }
 0x7a0   :  { %v954_v9 = vmul.f32 %v1716_v8, %v1712_v63  ;;  %1658 = vmatprep.subr.bf16.mxu1 %v1783_v13  ;;  %v1340_v63 = vld [vmem:[%s2113_s12 + $0x30] sm:$0xff] }
 0x7a1   :  { %v1681_v2 = vpack.c.bf16 %v1341_v0, %v1340_v63 }
 0x7a2   :  { %1595 = vmatmul.mubr.msk.f32.vlgmr.msra.gmra.mrb[8].mxu1 %vm293_vm3, %v954_v9 }
 0x7a3   :  { %1660 = vmatpush3.bf16.msra.mxu1 %v1969_v23  ;;  %1608 = vmatprep.mubr.msk.f32.mxu1 %vm1777_vm1, %v1776_v36  ;;  %v1200_v23 = vmul.f32 %v1198_v20, %v1198_v20 }
 0x7a4   :  { %1670 = vmatprep.subr.bf16.mxu1 %v1669_v56 }
 0x7a5   :  { %v1202_v24 = vsel %vm67_vm0, %v1200_v23, 0.0 }
 0x871   :  { %v860_v39 = vpop.f32.mrb[6].mxu1 }
 0x872   :  { %v1586_v10 = vpop.f32.mrb[7].mxu1  ;;  %1609 = vmatmul.mubr.msk.f32.vlgmr.msra.gmra.mrb[10].mxu1 %vm216_vm2, %v860_v39 }
 0x873   :  { %1672 = vmatpush3.bf16.msra.mxu1 %v1669_v56 }
 0x874   :  { %1674 = vmatprep.subr.bf16.mxu1 %v1673_v59 }
 0x875   :  { %v1027_v11 = vpop.f32.mrb[8].mxu1 }
 0x876   :  { %v1596_v12 = vpop.f32.mrb[9].mxu1  ;;  %1602 = vmatmul.mubr.msk.f32.vlgmr.msra.gmra.mrb[12].mxu0 %vm216_vm2, %v1027_v11 }
 0x877   :  { %1664 = vmatpush3.bf16.msra.mxu0 %v1661_v42  ;;  %1676 = vmatpush3.bf16.msra.mxu1 %v1673_v59 }
 0x878   :  { %1666 = vmatprep.subr.bf16.mxu0 %v1665_v45  ;;  %1678 = vmatprep.subr.bf16.mxu1 %v1677_v62 }
 0x87b   :  { %1668 = vmatpush3.bf16.msra.mxu0 %v1665_v45  ;;  %1680 = vmatpush3.bf16.msra.mxu1 %v1677_v62 }
 0x87c   :  { %1682 = vmatprep.subr.bf16.mxu1 %v1681_v2 }
 0x87f   :  { %1684 = vmatpush3.bf16.msra.mxu1 %v1681_v2 }
 0x945   :  { %v1173_v15 = vpop.f32.mrb[10].mxu1 }
 0x946   :  { %v1610_v16 = vpop.f32.mrb[11].mxu1 }
 0x949   :  { %v1100_v13 = vpop.f32.mrb[12].mxu0 }
 0x94a   :  { %v1174_v18 = vadd.f32 %v1173_v15, %v1100_v13  ;;  %v1603_v19 = vpop.f32.mrb[13].mxu0  ;;  %v1479_v13 = vld [vmem:[%s2114_s13] ss:$0 sm:$0xff] }
 0x94c   :  { %v1185_v21 = vadd.f32 %v1473_v48, %v1174_v18 }
 0x94e   :  { %v2025_v36 = vadd.f32 %v1185_v21, %v1877_v1 }
 0x950   :  { %v1193_v22 = vsel %vm67_vm0, %v2025_v36, 0.0 }
 0x951   :  { %1194 = vadd.xlane.f32.xlu0 %v1193_v22 }
 0x955   :  { %1203 = vadd.xlane.f32.xlu0 %v1202_v24 }
 0x9de   :  { %v1195_v25 = vpop.xlane.xlu0 %1194 }
 0x9df   :  { %v1197_v26 = vmul.f32 0.03125, %v1195_v25 }
 0x9e1   :  { %v1199_v27 = vsub.f32 %v2025_v36, %v1197_v26 }
 0x9e2   :  { %v1204_v28 = vpop.xlane.xlu0 %1203 }
 0x9e3   :  { %v1208_v29 = vmul.f32 0.03125, %v1204_v28  ;;  %v1201_v30 = vmul.f32 %v1199_v27, %v1199_v27 }
 0x9e5   :  { %v1210_v31 = vadd.f32 1e-05, %v1208_v29  ;;  %v1205_v32 = vsel %vm67_vm0, %v1201_v30, 0.0 }
 0x9e6   :  { %1206 = vadd.xlane.f32.xlu1 %v1205_v32 }
 0x9e7   :  { %1717 = vrsqrt.f32 %v1210_v31 }
 0x9f1   :  { %v1718_v1 = vpop.eup %1717 }
 0x9f2   :  { %v1214_v34 = vmul.f32 %v1718_v1, %v1198_v20 }
 0x9f4   :  { %v1222_v37 = vmul.f32 %v1474_v33, %v1214_v34 }
 0x9f6   :  { %v1230_v38 = vadd.f32 %v1475_v35, %v1222_v37 }
 0x9f8   :  { %1619 = vmatprep.mubr.msk.f32.mxu0 %vm67_vm0, %v1230_v38 }
 0xa73   :  { %v1207_v46 = vpop.xlane.xlu1 %1206 }
 0xa74   :  { %v1209_v47 = vmul.f32 0.03125, %v1207_v46 }
 0xa76   :  { %v1211_v50 = vadd.f32 1e-05, %v1209_v47 }
 0xa78   :  { %1719 = vrsqrt.f32 %v1211_v50 }
 0xa82   :  { %v1720_v51 = vpop.eup %1719 }
 0xa83   :  { %v1215_v52 = vmul.f32 %v1720_v51, %v1199_v27 }
 0xa85   :  { %v1223_v48 = vmul.f32 %v1474_v33, %v1215_v52 }
 0xa87   :  { %v1231_v49 = vadd.f32 %v1475_v35, %v1223_v48 }
 0xa89   :  { %1620 = vmatmul.mubr.msk.f32.vlgmr.msra.gmra.mrb[14].mxu0 %vm67_vm0, %v1231_v49 }
 0xb5c   :  { %v1621_v4 = vpop.f32.mrb[14].mxu0 }
 0xb5d   :  { %v1321_v5 = vadd.f32 %v1621_v4, %v1476_v3  ;;  %v1315_v6 = vpop.f32.mrb[15].mxu0 }
 0xb5e   :  { %v1316_v7 = vadd.f32 %v1476_v3, %v1315_v6 }
 0xb5f   :  { %v1327_v8 = vmul.f32 0.70710677, %v1321_v5  ;;  %v1325_v15 = vmul.f32 0.5, %v1321_v5 }
 0xb60   :  { %v1326_v9 = vmul.f32 0.70710677, %v1316_v7  ;;  %v1324_v12 = vmul.f32 0.5, %v1316_v7 }
 0xb61   :  { %1721 = verf.f32 %v1327_v8 }
 0xb62   :  { %1723 = verf.f32 %v1326_v9 }
 0xb6b   :  { %v1722_v39 = vpop.eup %1721 }
 0xb6c   :  { %v1724_v10 = vpop.eup %1723  ;;  %v1331_v11 = vadd.f32 1.0, %v1722_v39 }
 0xb6d   :  { %v1330_v14 = vadd.f32 1.0, %v1724_v10 }
 0xb6e   :  { %v1333_v17 = vmul.f32 %v1331_v11, %v1325_v15 }
 0xb6f   :  { %v1332_v16 = vmul.f32 %v1330_v14, %v1324_v12 }
 0xb71   :  { %1638 = vmatprep.mubr.msk.f32.mxu1 %vm1349_vm4, %v1332_v16 }
 0xb72   :  { %1639 = vmatmul.mubr.msk.f32.vlgmr.msra.gmra.mrb[12].mxu1 %vm1349_vm4, %v1333_v17 }
 0xc45   :  { %v1640_v18 = vpop.f32.mrb[12].mxu1 }
 0xc46   :  { %v1428_v19 = vadd.f32 %v1640_v18, %v1479_v13  ;;  %v1422_v20 = vpop.f32.mrb[13].mxu1 }
 0xc47   :  { %v1423_v21 = vadd.f32 %v1479_v13, %v1422_v20 }
 0xc48   :  { %v1432_v22 = vadd.f32 %v1428_v19, %v2025_v36 }
 0xc49   :  { %v1431_v23 = vadd.f32 %v1423_v21, %v2004_v53 }
 0xc4a   :  { %1434 = vst.msk [vmem:[#allocation5 + $0x8] sm:$0xff] %vm67_vm0, %v1432_v22 }
 0xc4b   :  { %1433 = vst.msk [vmem:[#allocation5] sm:$0xff] %vm67_vm0, %v1431_v23 }
 0xc4c   :  { %1758 = shalt.err (!%p1755_p12)
}
 0xc4d   :  { %s1759_s5 = scalar_lea.hbm %s2115_s14, 256 }
 0xc4e   :  { %p1760_p13 = scmp.ne.s32.totalorder %s2115_s14, %s1759_s5  ;;  %p1763_p0 = scmp.lt.u32.totalorder %s1759_s5, %s2115_s14 }
 0xc50   :  { %p1765_p1 = pnand %p1763_p0, %p1760_p13 }
 0xc52   :  { %1768 = shalt.err (!%p1765_p1)
}
 0xc53   :  { %1446 = dma.vmem_to_hbm [thread:$0]  %s1441_s22, 256, %s2115_s14, [#allocation4], %s1774_s23, %s1774_s23, %s1775_s24  }
 0xc54   :  { %1771 = dma.done.wait [#allocation4], 256  }
 0xc55   :  { %1772 = vsyncadd [#allocation4], 4294967040 }
 0xc56   :  { %1450 = vsyncpa [#allocation3], 1 }
 0xc57   :  { %1451 = vsyncpa [#allocation4], 1 }

</bundles_post_ra>
